<compile_context>
chip_gen: v5e
topology: v5e:2x2
jax: 0.10.0
libtpu: 0.0.40
codegen_flags: <defaults>
</compile_context>

<pallas_src>
import jax
import jax.numpy as jnp
from jax.experimental import pallas as pl
from jax.experimental.pallas import tpu as pltpu


def _round_up(x, m):
    return ((x + m - 1) // m) * m


# ----------------------------------------------------------------------------
# Kernel
# ----------------------------------------------------------------------------
def _mlp_kernel(x_ref, w1_ref, b1_ref, w2_ref, b2_ref, o_ref, acc_ref):
    k = pl.program_id(1)

    @pl.when(k == 0)
    def _():
        acc_ref[...] = jnp.zeros_like(acc_ref)

    cdt = w1_ref.dtype                       # MXU operand dtype
    x = x_ref[...]
    if x.dtype != cdt:                       # no-op when wrapper pre-cast x
        x = x.astype(cdt)

    # fc1 (LoRA pre-merged): this hidden block's columns; bias + ReLU in f32.
    h = jnp.dot(x, w1_ref[...], preferred_element_type=jnp.float32)
    h = jnp.maximum(h + b1_ref[...], 0.0)
    # dropout (eval mode) == identity

    # fc2 (LoRA pre-merged): accumulate this hidden block's contribution.
    acc_ref[...] += jnp.dot(h.astype(cdt), w2_ref[...],
                            preferred_element_type=jnp.float32)

    @pl.when(k == pl.num_programs(1) - 1)
    def _():
        # dropout (eval mode) == identity
        o_ref[...] = (acc_ref[...] + b2_ref[...]).astype(o_ref.dtype)


# ----------------------------------------------------------------------------
# Parameter preparation
# ----------------------------------------------------------------------------
def prepare_params(raw_params, *, r=8, alpha=32, param_dtype=jnp.float32):
    """Merge LoRA into the dense weights (folding alpha/r) and pad:
       in_features  -> multiple of 128,
       hidden/out   -> multiples of 256 (full 256x256 MXU passes on v6e/v7x).
    bf16 param_dtype is the fast path on ALL generations (v5e/v6e/v7x MXUs are
    natively bf16); biases stay f32 so the epilogue math is f32 everywhere.
    Returns ((w1_eff, b1, w2_eff, b2), out_features)."""
    w1t, b1, a1t, lb1t, w2t, b2, a2t, lb2t = raw_params
    s = float(alpha) / float(r)

    w1_eff = w1t + s * (a1t @ lb1t)          # (in, hid)
    w2_eff = w2t + s * (a2t @ lb2t)          # (hid, out)

    in_f, hid = w1_eff.shape
    out_f = w2_eff.shape[1]
    in_p = _round_up(in_f, 128)
    hid_p = _round_up(hid, 256)
    out_p = _round_up(out_f, 256)

    w1_eff = jnp.pad(w1_eff, ((0, in_p - in_f), (0, hid_p - hid)))
    b1p = jnp.pad(b1, ((0, 0), (0, hid_p - hid)))
    w2_eff = jnp.pad(w2_eff, ((0, hid_p - hid), (0, out_p - out_f)))
    b2p = jnp.pad(b2, ((0, 0), (0, out_p - out_f)))

    prepared = (w1_eff.astype(param_dtype), b1p.astype(jnp.float32),
                w2_eff.astype(param_dtype), b2p.astype(jnp.float32))
    return prepared, out_f


# ----------------------------------------------------------------------------
# VMEM budgeting / tile selection
# ----------------------------------------------------------------------------
def _vmem_cap_bytes():
    """Physical per-TensorCore VMEM minus headroom for Mosaic scratch."""
    try:
        cap = int(pltpu.get_tpu_info().vmem_capacity_bytes)
    except Exception:
        cap = 64 * 1024 * 1024          # conservative fallback (v7x per-TC)
    return max(cap - 8 * 1024 * 1024, 16 * 1024 * 1024)


def _choose_tiles(tm, in_p, hid_p, out_p, w_itemsize, out_itemsize, cap, sub,
                  hidden_block=None):
    """Pick (tm, hidden_block) so the resident footprint (incl. implicit
    temporaries) fits under `cap`; returns (tm, th, est_bytes)."""

    def est(tm_, th_):
        nh = hid_p // th_
        n_wbuf = 1 if nh == 1 else 2             # Buffered(1) when hid untiled
        e = 2 * tm_ * in_p * w_itemsize          # x tile (cast to weight dtype)
        e += 2 * tm_ * out_p * out_itemsize      # out tile
        e += n_wbuf * (in_p * th_ + th_ * out_p) * w_itemsize   # w1 + w2 blocks
        e += n_wbuf * 8 * th_ * 4                # b1 block (sublane-padded f32)
        e += 8 * out_p * 4                       # b2 (single-buffered)
        e += tm_ * out_p * 4                     # f32 accumulator scratch
        e += tm_ * th_ * (4 + w_itemsize)        # h in f32 + its cast copy
        e += tm_ * out_p * 4                     # y in f32 before output cast
        return e

    if hidden_block is not None:
        th = min(int(hidden_block), hid_p)
        assert hid_p % th == 0, "hidden_block must divide the padded hidden dim"
        return tm, th, est(tm, th)

    m = hid_p // 256
    th_cands = [256 * d for d in range(m, 0, -1) if m % d == 0]  # divisors, desc
    while True:
        for th in th_cands:
            if est(tm, th) <= cap:
                return tm, th, est(tm, th)
        if tm <= sub:
            # TODO(synk): even the minimal tiling exceeds the VMEM budget;
            # declare the estimate and let the compiler decide.
            return tm, th_cands[-1], est(tm, th_cands[-1])
        tm = max(sub, (tm // 2) // sub * sub)


# ----------------------------------------------------------------------------
# Wrapper
# ----------------------------------------------------------------------------
def mlp_with_lora(x, prepared, out_features, *, tm=256, hidden_block=None):
    """Eval-mode forward of MlpWithLoRA (dropout == identity).
    x: (..., in_features) -> (..., out_features)."""
    w1, b1, w2, b2 = prepared
    in_p, hid_p = w1.shape
    out_p = w2.shape[1]
    w_dtype = w1.dtype
    out_dtype = x.dtype

    lead = x.shape[:-1]
    in_f = x.shape[-1]
    n = 1
    for d in lead:
        n *= d
    x2 = x.reshape(n, in_f)

    # Cast activations to the weight dtype in the wrapper (halves the x-tile
    # DMA traffic for bf16 weights); f32 accumulation happens in-kernel.
    if x2.dtype != w_dtype:
        x2 = x2.astype(w_dtype)

    # Sublane minimum: 16 for sub-32-bit activations, 8 for f32.
    sub = 16 if jnp.dtype(w_dtype).itemsize < 4 else 8
    tm_eff = min(int(tm), _round_up(n, sub))
    tm_eff = max(_round_up(tm_eff, sub), sub)

    cap = _vmem_cap_bytes()
    tm_eff, th, est = _choose_tiles(
        tm_eff, in_p, hid_p, out_p,
        w_itemsize=jnp.dtype(w_dtype).itemsize,
        out_itemsize=jnp.dtype(out_dtype).itemsize,
        cap=cap, sub=sub, hidden_block=hidden_block)

    n_pad = _round_up(n, tm_eff)
    pad_rows = n_pad - n
    pad_cols = in_p - in_f
    if pad_rows or pad_cols:
        x2 = jnp.pad(x2, ((0, pad_rows), (0, pad_cols)))

    nh = hid_p // th
    grid = (n_pad // tm_eff, nh)
    vmem_limit = int(min(cap, max(est + est // 4, 32 * 1024 * 1024)))

    def spec(shape, imap, mode=None):
        if mode is None:
            return pl.BlockSpec(shape, imap)
        return pl.BlockSpec(shape, imap, pipeline_mode=mode)

    def build(weight_mode, const_mode):
        return pl.pallas_call(
            _mlp_kernel,
            out_shape=jax.ShapeDtypeStruct((n_pad, out_p), out_dtype),
            grid_spec=pltpu.PrefetchScalarGridSpec(
                num_scalar_prefetch=0,
                grid=grid,
                in_specs=[
                    spec((tm_eff, in_p), lambda i, k: (i, 0)),          # x tile
                    spec((in_p, th), lambda i, k: (0, k), weight_mode),  # w1 blk
                    spec((1, th), lambda i, k: (0, k), weight_mode),     # b1 blk
                    spec((th, out_p), lambda i, k: (k, 0), weight_mode),  # w2 blk
                    spec((1, out_p), lambda i, k: (0, 0), const_mode),   # b2
                ],
                out_specs=pl.BlockSpec((tm_eff, out_p), lambda i, k: (i, 0)),
                scratch_shapes=[pltpu.VMEM((tm_eff, out_p), jnp.float32)],
            ),
            compiler_params=pltpu.CompilerParams(
                dimension_semantics=("parallel", "arbitrary"),
                vmem_limit_bytes=vmem_limit),
        )

    # Single-buffer grid-invariant blocks (constant index_map => never re-DMAd).
    weight_mode = pl.Buffered(1) if nh == 1 else None
    try:
        out = build(weight_mode, pl.Buffered(1))(x2, w1, b1, w2, b2)
    except Exception:
        # TODO(synk): pipeline_mode=pl.Buffered(1) rejected by this jax build;
        # fall back to default double-buffering of the weight blocks.
        out = build(None, None)(x2, w1, b1, w2, b2)

    out = out[:n, :out_features]
    return out.reshape(*lead, out_features)


# ----------------------------------------------------------------------------
# Init + pure-JAX reference (mirrors the PyTorch module, eval mode)
# ----------------------------------------------------------------------------
def init_params(key, in_features, hidden_features, out_features, r=8,
                zero_lora_b=True):
    """nn.Linear init: uniform(-1/sqrt(fan_in), 1/sqrt(fan_in)); lora_B is
    zeroed in the PyTorch module (zero_lora_b=False exercises the LoRA path).
    Weights are returned pre-transposed to (in, out)."""
    ks = jax.random.split(key, 8)

    def lin_w(k, fan_in, fan_out):
        bound = 1.0 / (fan_in ** 0.5)
        return jax.random.uniform(k, (fan_out, fan_in), jnp.float32,
                                  -bound, bound).T

    def lin_b(k, fan_in, fan_out):
        bound = 1.0 / (fan_in ** 0.5)
        return jax.random.uniform(k, (1, fan_out), jnp.float32, -bound, bound)

    w1t = lin_w(ks[0], in_features, hidden_features)
    b1 = lin_b(ks[1], in_features, hidden_features)
    a1t = lin_w(ks[2], in_features, r)
    w2t = lin_w(ks[3], hidden_features, out_features)
    b2 = lin_b(ks[4], hidden_features, out_features)
    a2t = lin_w(ks[5], hidden_features, r)

    if zero_lora_b:
        lb1t = jnp.zeros((r, hidden_features), jnp.float32)
        lb2t = jnp.zeros((r, out_features), jnp.float32)
    else:
        lb1t = 0.05 * jax.random.normal(ks[6], (r, hidden_features), jnp.float32)
        lb2t = 0.05 * jax.random.normal(ks[7], (r, out_features), jnp.float32)

    return (w1t, b1, a1t, lb1t, w2t, b2, a2t, lb2t)


def _reference(x, raw_params, r=8, alpha=32):
    w1t, b1, a1t, lb1t, w2t, b2, a2t, lb2t = raw_params
    s = alpha / r
    h = x @ w1t + b1 + (x @ a1t) @ lb1t * s
    h = jnp.maximum(h, 0.0)
    y = h @ w2t + b2 + (h @ a2t) @ lb2t * s
    return y


if __name__ == "__main__":
    r, alpha = 8, 32
    key = jax.random.PRNGKey(0)
    kx, kp, kp2 = jax.random.split(key, 3)

    # --- case 1: small MLP, f32 weights (tight check) -----------------------
    in_f, hid_f, out_f = 32, 64, 32
    x = jax.random.normal(kx, (2, 8, in_f), jnp.float32)
    raw = init_params(kp, in_f, hid_f, out_f, r=r, zero_lora_b=False)
    y_ref = _reference(x, raw, r=r, alpha=alpha)

    prep_f32, of = prepare_params(raw, r=r, alpha=alpha,
                                  param_dtype=jnp.float32)
    y = jax.block_until_ready(mlp_with_lora(x, prep_f32, of, tm=256))
    assert y.shape == (2, 8, out_f)
    assert jnp.allclose(y, y_ref, atol=1e-3, rtol=1e-3)

    # --- case 2: bf16 weights + pre-cast bf16 activations (loose check) -----
    prep_bf16, _ = prepare_params(raw, r=r, alpha=alpha,
                                  param_dtype=jnp.bfloat16)
    y_bf16 = jax.block_until_ready(mlp_with_lora(x, prep_bf16, of, tm=256))
    assert y_bf16.dtype == x.dtype
    assert jnp.allclose(y_bf16, y_ref, atol=8e-2, rtol=8e-2)

    # --- case 3: exercise the hidden-block accumulation path (nh > 1) -------
    hid_big = 512
    raw_big = init_params(kp2, in_f, hid_big, out_f, r=r, zero_lora_b=False)
    y_ref_big = _reference(x, raw_big, r=r, alpha=alpha)
    prep_big, of_big = prepare_params(raw_big, r=r, alpha=alpha,
                                      param_dtype=jnp.float32)
    y_big = jax.block_until_ready(
        mlp_with_lora(x, prep_big, of_big, tm=256, hidden_block=256))
    assert y_big.shape == (2, 8, out_f)
    assert jnp.allclose(y_big, y_ref_big, atol=1e-3, rtol=1e-3)

    print("KERNEL_OK")
</pallas_src>

<mosaic_0001>
module attributes {stable_mosaic.version = 11 : i64} {
  func.func @_mlp_kernel(%arg0: i32, %arg1: i32, %arg2: memref<16x128xf32, #tpu.memory_space<vmem>>, %arg3: memref<128x256xf32, #tpu.memory_space<vmem>>, %arg4: memref<1x256xf32, #tpu.memory_space<vmem>>, %arg5: memref<256x256xf32, #tpu.memory_space<vmem>>, %arg6: memref<1x256xf32, #tpu.memory_space<vmem>>, %arg7: memref<16x256xf32, #tpu.memory_space<vmem>>, %arg8: memref<16x256xf32, #tpu.memory_space<vmem>>) attributes {dimension_semantics = [#tpu.dimension_semantics<parallel>, #tpu.dimension_semantics<arbitrary>], iteration_bounds = array<i64: 1, 1>, scalar_prefetch = 0 : i64, scratch_operands = 1 : i64, tpu.core_type = #tpu.core_type<tc>, window_params = [{transform_indices = @transform_0, window_bounds = array<i64: 16, 128>}, {pipeline_mode = #tpu.pipeline_mode<synchronous>, transform_indices = @transform_1, window_bounds = array<i64: 128, 256>}, {pipeline_mode = #tpu.pipeline_mode<synchronous>, transform_indices = @transform_2, window_bounds = array<i64: 1, 256>}, {pipeline_mode = #tpu.pipeline_mode<synchronous>, transform_indices = @transform_3, window_bounds = array<i64: 256, 256>}, {pipeline_mode = #tpu.pipeline_mode<synchronous>, transform_indices = @transform_4, window_bounds = array<i64: 1, 256>}, {transform_indices = @transform_5, window_bounds = array<i64: 16, 256>}]} {
    %c0_i32 = arith.constant 0 : i32
    %0 = arith.cmpi eq, %arg1, %c0_i32 : i32
    %1 = arith.extui %0 : i1 to i32
    %c0_i32_0 = arith.constant 0 : i32
    %2 = arith.cmpi ne, %1, %c0_i32_0 : i32
    scf.if %2 {
      %cst_16 = arith.constant 0.000000e+00 : f32
      %19 = vector.broadcast %cst_16 : f32 to vector<16x256xf32>
      %c0_17 = arith.constant 0 : index
      %c0_18 = arith.constant 0 : index
      %20 = vector.load %arg8[%c0_17, %c0_18] : memref<16x256xf32, #tpu.memory_space<vmem>>, vector<16x256xf32>
      tpu.vector_store %arg8[%c0_17, %c0_18], %19 {strides = array<i32>} : memref<16x256xf32, #tpu.memory_space<vmem>>, vector<16x256xf32>,
    } else {
    }
    %c0 = arith.constant 0 : index
    %c0_1 = arith.constant 0 : index
    %3 = vector.load %arg2[%c0, %c0_1] : memref<16x128xf32, #tpu.memory_space<vmem>>, vector<16x128xf32>
    %c0_2 = arith.constant 0 : index
    %c0_3 = arith.constant 0 : index
    %4 = vector.load %arg3[%c0_2, %c0_3] : memref<128x256xf32, #tpu.memory_space<vmem>>, vector<128x256xf32>
    %cst = arith.constant dense<0.000000e+00> : vector<16x256xf32>
    %5 = tpu.matmul %3, %4, %cst {dimension_numbers = #tpu.dot_dimension_numbers<[1], [0], [0], [1], [0, 0, 1, 1], [], []>} : vector<16x128xf32>, vector<128x256xf32>, vector<16x256xf32> -> vector<16x256xf32>
    %c0_4 = arith.constant 0 : index
    %c0_5 = arith.constant 0 : index
    %6 = vector.load %arg4[%c0_4, %c0_5] : memref<1x256xf32, #tpu.memory_space<vmem>>, vector<1x256xf32>
    %7 = vector.broadcast %6 : vector<1x256xf32> to vector<16x256xf32>
    %8 = arith.addf %5, %7 : vector<16x256xf32>
    %cst_6 = arith.constant 0.000000e+00 : f32
    %9 = vector.broadcast %cst_6 : f32 to vector<16x256xf32>
    %10 = arith.maximumf %8, %9 : vector<16x256xf32>
    %c0_7 = arith.constant 0 : index
    %c0_8 = arith.constant 0 : index
    %11 = vector.load %arg8[%c0_7, %c0_8] : memref<16x256xf32, #tpu.memory_space<vmem>>, vector<16x256xf32>
    %c0_9 = arith.constant 0 : index
    %c0_10 = arith.constant 0 : index
    %12 = vector.load %arg5[%c0_9, %c0_10] : memref<256x256xf32, #tpu.memory_space<vmem>>, vector<256x256xf32>
    %cst_11 = arith.constant dense<0.000000e+00> : vector<16x256xf32>
    %13 = tpu.matmul %10, %12, %cst_11 {dimension_numbers = #tpu.dot_dimension_numbers<[1], [0], [0], [1], [0, 0, 1, 1], [], []>} : vector<16x256xf32>, vector<256x256xf32>, vector<16x256xf32> -> vector<16x256xf32>
    %14 = arith.addf %11, %13 : vector<16x256xf32>
    %c0_12 = arith.constant 0 : index
    %c0_13 = arith.constant 0 : index
    %15 = vector.load %arg8[%c0_12, %c0_13] : memref<16x256xf32, #tpu.memory_space<vmem>>, vector<16x256xf32>
    tpu.vector_store %arg8[%c0_12, %c0_13], %14 {strides = array<i32>} : memref<16x256xf32, #tpu.memory_space<vmem>>, vector<16x256xf32>,
    %c0_i32_14 = arith.constant 0 : i32
    %16 = arith.cmpi eq, %arg1, %c0_i32_14 : i32
    %17 = arith.extui %16 : i1 to i32
    %c0_i32_15 = arith.constant 0 : i32
    %18 = arith.cmpi ne, %17, %c0_i32_15 : i32
    scf.if %18 {
      %c0_16 = arith.constant 0 : index
      %c0_17 = arith.constant 0 : index
      %19 = vector.load %arg8[%c0_16, %c0_17] : memref<16x256xf32, #tpu.memory_space<vmem>>, vector<16x256xf32>
      %c0_18 = arith.constant 0 : index
      %c0_19 = arith.constant 0 : index
      %20 = vector.load %arg6[%c0_18, %c0_19] : memref<1x256xf32, #tpu.memory_space<vmem>>, vector<1x256xf32>
      %21 = vector.broadcast %20 : vector<1x256xf32> to vector<16x256xf32>
      %22 = arith.addf %19, %21 : vector<16x256xf32>
      %c0_20 = arith.constant 0 : index
      %c0_21 = arith.constant 0 : index
      %23 = vector.load %arg7[%c0_20, %c0_21] : memref<16x256xf32, #tpu.memory_space<vmem>>, vector<16x256xf32>
      tpu.vector_store %arg7[%c0_20, %c0_21], %22 {strides = array<i32>} : memref<16x256xf32, #tpu.memory_space<vmem>>, vector<16x256xf32>,
    } else {
    }
    return
  }
  func.func @transform_0(%arg0: i32, %arg1: i32) -> (i32, i32) {
    %c0_i32 = arith.constant 0 : i32
    %c0_i32_0 = arith.constant 0 : i32
    return %arg0, %c0_i32 : i32, i32
  }
  func.func @transform_1(%arg0: i32, %arg1: i32) -> (i32, i32) {
    %c0_i32 = arith.constant 0 : i32
    %c0_i32_0 = arith.constant 0 : i32
    return %c0_i32, %arg1 : i32, i32
  }
  func.func @transform_2(%arg0: i32, %arg1: i32) -> (i32, i32) {
    %c0_i32 = arith.constant 0 : i32
    %c0_i32_0 = arith.constant 0 : i32
    return %c0_i32, %arg1 : i32, i32
  }
  func.func @transform_3(%arg0: i32, %arg1: i32) -> (i32, i32) {
    %c0_i32 = arith.constant 0 : i32
    %c0_i32_0 = arith.constant 0 : i32
    return %arg1, %c0_i32 : i32, i32
  }
  func.func @transform_4(%arg0: i32, %arg1: i32) -> (i32, i32) {
    %c0_i32 = arith.constant 0 : i32
    %c0_i32_0 = arith.constant 0 : i32
    %c0_i32_1 = arith.constant 0 : i32
    return %c0_i32, %c0_i32_0 : i32, i32
  }
  func.func @transform_5(%arg0: i32, %arg1: i32) -> (i32, i32) {
    %c0_i32 = arith.constant 0 : i32
    %c0_i32_0 = arith.constant 0 : i32
    return %arg0, %c0_i32 : i32, i32
  }
}

module attributes {stable_mosaic.version = 11 : i64} {
  func.func @_mlp_kernel(%arg0: i32, %arg1: i32, %arg2: memref<16x128xf32, #tpu.memory_space<vmem>>, %arg3: memref<128x256xf32, #tpu.memory_space<vmem>>, %arg4: memref<1x256xf32, #tpu.memory_space<vmem>>, %arg5: memref<256x256xf32, #tpu.memory_space<vmem>>, %arg6: memref<1x256xf32, #tpu.memory_space<vmem>>, %arg7: memref<16x256xf32, #tpu.memory_space<vmem>>, %arg8: memref<16x256xf32, #tpu.memory_space<vmem>>) attributes {dimension_semantics = [#tpu.dimension_semantics<parallel>, #tpu.dimension_semantics<arbitrary>], iteration_bounds = array<i64: 1, 1>, scalar_prefetch = 0 : i64, scratch_operands = 1 : i64, tpu.core_type = #tpu.core_type<tc>, window_params = [{transform_indices = @transform_0, window_bounds = array<i64: 16, 128>}, {transform_indices = @transform_1, window_bounds = array<i64: 128, 256>}, {transform_indices = @transform_2, window_bounds = array<i64: 1, 256>}, {transform_indices = @transform_3, window_bounds = array<i64: 256, 256>}, {pipeline_mode = #tpu.pipeline_mode<synchronous>, transform_indices = @transform_4, window_bounds = array<i64: 1, 256>}, {transform_indices = @transform_5, window_bounds = array<i64: 16, 256>}]} {
    %c0_i32 = arith.constant 0 : i32
    %0 = arith.cmpi eq, %arg1, %c0_i32 : i32
    %1 = arith.extui %0 : i1 to i32
    %c0_i32_0 = arith.constant 0 : i32
    %2 = arith.cmpi ne, %1, %c0_i32_0 : i32
    scf.if %2 {
      %cst_16 = arith.constant 0.000000e+00 : f32
      %19 = vector.broadcast %cst_16 : f32 to vector<16x256xf32>
      %c0_17 = arith.constant 0 : index
      %c0_18 = arith.constant 0 : index
      %20 = vector.load %arg8[%c0_17, %c0_18] : memref<16x256xf32, #tpu.memory_space<vmem>>, vector<16x256xf32>
      tpu.vector_store %arg8[%c0_17, %c0_18], %19 {strides = array<i32>} : memref<16x256xf32, #tpu.memory_space<vmem>>, vector<16x256xf32>,
    } else {
    }
    %c0 = arith.constant 0 : index
    %c0_1 = arith.constant 0 : index
    %3 = vector.load %arg2[%c0, %c0_1] : memref<16x128xf32, #tpu.memory_space<vmem>>, vector<16x128xf32>
    %c0_2 = arith.constant 0 : index
    %c0_3 = arith.constant 0 : index
    %4 = vector.load %arg3[%c0_2, %c0_3] : memref<128x256xf32, #tpu.memory_space<vmem>>, vector<128x256xf32>
    %cst = arith.constant dense<0.000000e+00> : vector<16x256xf32>
    %5 = tpu.matmul %3, %4, %cst {dimension_numbers = #tpu.dot_dimension_numbers<[1], [0], [0], [1], [0, 0, 1, 1], [], []>} : vector<16x128xf32>, vector<128x256xf32>, vector<16x256xf32> -> vector<16x256xf32>
    %c0_4 = arith.constant 0 : index
    %c0_5 = arith.constant 0 : index
    %6 = vector.load %arg4[%c0_4, %c0_5] : memref<1x256xf32, #tpu.memory_space<vmem>>, vector<1x256xf32>
    %7 = vector.broadcast %6 : vector<1x256xf32> to vector<16x256xf32>
    %8 = arith.addf %5, %7 : vector<16x256xf32>
    %cst_6 = arith.constant 0.000000e+00 : f32
    %9 = vector.broadcast %cst_6 : f32 to vector<16x256xf32>
    %10 = arith.maximumf %8, %9 : vector<16x256xf32>
    %c0_7 = arith.constant 0 : index
    %c0_8 = arith.constant 0 : index
    %11 = vector.load %arg8[%c0_7, %c0_8] : memref<16x256xf32, #tpu.memory_space<vmem>>, vector<16x256xf32>
    %c0_9 = arith.constant 0 : index
    %c0_10 = arith.constant 0 : index
    %12 = vector.load %arg5[%c0_9, %c0_10] : memref<256x256xf32, #tpu.memory_space<vmem>>, vector<256x256xf32>
    %cst_11 = arith.constant dense<0.000000e+00> : vector<16x256xf32>
    %13 = tpu.matmul %10, %12, %cst_11 {dimension_numbers = #tpu.dot_dimension_numbers<[1], [0], [0], [1], [0, 0, 1, 1], [], []>} : vector<16x256xf32>, vector<256x256xf32>, vector<16x256xf32> -> vector<16x256xf32>
    %14 = arith.addf %11, %13 : vector<16x256xf32>
    %c0_12 = arith.constant 0 : index
    %c0_13 = arith.constant 0 : index
    %15 = vector.load %arg8[%c0_12, %c0_13] : memref<16x256xf32, #tpu.memory_space<vmem>>, vector<16x256xf32>
    tpu.vector_store %arg8[%c0_12, %c0_13], %14 {strides = array<i32>} : memref<16x256xf32, #tpu.memory_space<vmem>>, vector<16x256xf32>,
    %c0_i32_14 = arith.constant 0 : i32
    %16 = arith.cmpi eq, %arg1, %c0_i32_14 : i32
    %17 = arith.extui %16 : i1 to i32
    %c0_i32_15 = arith.constant 0 : i32
    %18 = arith.cmpi ne, %17, %c0_i32_15 : i32
    scf.if %18 {
      %c0_16 = arith.constant 0 : index
      %c0_17 = arith.constant 0 : index
      %19 = vector.load %arg8[%c0_16, %c0_17] : memref<16x256xf32, #tpu.memory_space<vmem>>, vector<16x256xf32>
      %c0_18 = arith.constant 0 : index
      %c0_19 = arith.constant 0 : index
      %20 = vector.load %arg6[%c0_18, %c0_19] : memref<1x256xf32, #tpu.memory_space<vmem>>, vector<1x256xf32>
      %21 = vector.broadcast %20 : vector<1x256xf32> to vector<16x256xf32>
      %22 = arith.addf %19, %21 : vector<16x256xf32>
      %c0_20 = arith.constant 0 : index
      %c0_21 = arith.constant 0 : index
      %23 = vector.load %arg7[%c0_20, %c0_21] : memref<16x256xf32, #tpu.memory_space<vmem>>, vector<16x256xf32>
      tpu.vector_store %arg7[%c0_20, %c0_21], %22 {strides = array<i32>} : memref<16x256xf32, #tpu.memory_space<vmem>>, vector<16x256xf32>,
    } else {
    }
    return
  }
  func.func @transform_0(%arg0: i32, %arg1: i32) -> (i32, i32) {
    %c0_i32 = arith.constant 0 : i32
    %c0_i32_0 = arith.constant 0 : i32
    return %arg0, %c0_i32 : i32, i32
  }
  func.func @transform_1(%arg0: i32, %arg1: i32) -> (i32, i32) {
    %c0_i32 = arith.constant 0 : i32
    %c0_i32_0 = arith.constant 0 : i32
    return %c0_i32, %arg1 : i32, i32
  }
  func.func @transform_2(%arg0: i32, %arg1: i32) -> (i32, i32) {
    %c0_i32 = arith.constant 0 : i32
    %c0_i32_0 = arith.constant 0 : i32
    return %c0_i32, %arg1 : i32, i32
  }
  func.func @transform_3(%arg0: i32, %arg1: i32) -> (i32, i32) {
    %c0_i32 = arith.constant 0 : i32
    %c0_i32_0 = arith.constant 0 : i32
    return %arg1, %c0_i32 : i32, i32
  }
  func.func @transform_4(%arg0: i32, %arg1: i32) -> (i32, i32) {
    %c0_i32 = arith.constant 0 : i32
    %c0_i32_0 = arith.constant 0 : i32
    %c0_i32_1 = arith.constant 0 : i32
    return %c0_i32, %c0_i32_0 : i32, i32
  }
  func.func @transform_5(%arg0: i32, %arg1: i32) -> (i32, i32) {
    %c0_i32 = arith.constant 0 : i32
    %c0_i32_0 = arith.constant 0 : i32
    return %arg0, %c0_i32 : i32, i32
  }
}

</mosaic_0001>

<bundles_post_ra>
// kernel: tpu_custom_call.1
= control target key start
LH: loop header
LB: loop body
LE: loop exit
PB: predicated region body
PF: predicated region fallthrough
CT: control target
= control target key end

     0   :  { %10 = vsyncpa [#allocation4], 0  ;;  %s633_s0 = inlined_call_operand.hbm [shape: f32[16,128], index: 0, kind: input, shape index: {}]   ;;  %s634_s1 = inlined_call_operand.hbm [shape: f32[128,256], index: 1, kind: input, shape index: {}]   ;;  %s635_s2 = inlined_call_operand.hbm [shape: f32[1,256], index: 2, kind: input, shape index: {}]   ;;  %s636_s3 = inlined_call_operand.hbm [shape: f32[256,256], index: 3, kind: input, shape index: {}]   ;;  %s637_s4 = inlined_call_operand.vmem [shape: f32[1,256], index: 4, kind: input, shape index: {}]   ;;  %s638_s5 = inlined_call_operand.hbm [shape: f32[16,256], index: 5, kind: output, shape index: {}]  }
   0x1   :  { %11 = vsyncpa [#allocation7], 0 }
   0x2   :  { %12 = vsyncpa [#allocation10], 0  ;;  %s31_s20 = sshll.u32 %s634_s1, 4  ;;  %s32_s20 = int_to_ptr.hbm [resolvable:$true] %s31_s20 }
   0x3   :  { %13 = vsyncpa [#allocation5], 0  ;;  %s559_s21 = smov [#allocation6]   ;;  %s18_s25 = sshll.u32 %s633_s0, 4  ;;  %s19_s25 = int_to_ptr.hbm [resolvable:$true] %s18_s25 }
   0x4   :  { %s33_s22 = sshll.u32 %s559_s21, 4  ;;  %s560_s26 = smov 256   ;;  %s34_s22 = int_to_ptr.vmem [resolvable:$true] %s33_s22 }
   0x5   :  { %s561_s27 = smov 16   ;;  %s562_s28 = smov [#allocation3]  }
   0x6   :  { %39 = dma.hbm_to_vmem [thread:$0]  %s32_s20, 4096, %s34_s22, [#allocation7], %s560_s26, %s560_s26, %s561_s27  }
   0x7   :  { %s20_s29 = sshll.u32 %s562_s28, 4  ;;  %s563_s1 = smov 128   ;;  %s21_s29 = int_to_ptr.vmem [resolvable:$true] %s20_s29 }
   0x8   :  { %s564_s30 = smov 8   ;;  %s45_s8 = sshll.u32 %s635_s2, 4  ;;  %s46_s8 = int_to_ptr.hbm [resolvable:$true] %s45_s8 }
   0x9   :  { %26 = dma.hbm_to_vmem [thread:$0]  %s19_s25, 256, %s21_s29, [#allocation4], %s563_s1, %s563_s1, %s564_s30  }
   0xa   :  { %s565_s9 = smov [#allocation8]   ;;  %s55_s12 = sshll.u32 %s636_s3, 4  ;;  %s56_s12 = int_to_ptr.hbm [resolvable:$true] %s55_s12 }
   0xb   :  { %s47_s0 = sshll.u32 %s565_s9, 4  ;;  %s566_s13 = smov [#allocation9]   ;;  %s48_s0 = int_to_ptr.vmem [resolvable:$true] %s47_s0 }
   0xc   :  { %50 = dma.hbm_to_vmem [thread:$0]  %s46_s8, 32, %s48_s0, [#allocation7]  }
   0xd   :  { %s57_s14 = sshll.u32 %s566_s13, 4  ;;  %s58_s14 = int_to_ptr.vmem [resolvable:$true] %s57_s14 }
   0xe   :  { %63 = dma.hbm_to_vmem [thread:$0]  %s56_s12, 8192, %s58_s14, [#allocation10], %s560_s26, %s560_s26, %s561_s27  }
   0xf   :  { %551 = dma.done.wait [#allocation4], 256  }
  0x10   :  { %552 = vsyncadd [#allocation4], 4294967040 }
  0x11   :  { %553 = dma.done.wait [#allocation7], 4128  }
  0x12   :  { %554 = vsyncadd [#allocation7], 4294963168 }
  0x13   :  { %555 = dma.done.wait [#allocation10], 8192  }
  0x14   :  { %556 = vsyncadd [#allocation10], 4294959104  ;;  %v122_v0 = vld [vmem:[#allocation6 + $0xf0] sm:$0xff]  ;;  %v123_v1 = vld [vmem:[#allocation6 + $0xf8] sm:$0xff]  ;;  %s375_s18 = sshll.u32 %s638_s5, 4  ;;  %s376_s18 = int_to_ptr.hbm [resolvable:$true] %s375_s18 }
  0x15   :  { %v120_v2 = vld [vmem:[#allocation6 + $0xe0] sm:$0xff]  ;;  %130 = vmatpush.msra.mxu0 %v122_v0  ;;  %153 = vmatpush.msra.mxu1 %v123_v1  ;;  %v121_v3 = vld [vmem:[#allocation6 + $0xe8] sm:$0xff]  ;;  %v118_v4 = vld [vmem:[#allocation6 + $0xd0] sm:$0xff] }
  0x16   :  { %v119_v5 = vld [vmem:[#allocation6 + $0xd8] sm:$0xff]  ;;  %v116_v6 = vld [vmem:[#allocation6 + $0xc0] sm:$0xff]  ;;  %v117_v7 = vld [vmem:[#allocation6 + $0xc8] sm:$0xff] }
  0x17   :  { %131 = vmatpush.msra.mxu0 %v120_v2  ;;  %154 = vmatpush.msra.mxu1 %v121_v3  ;;  %v114_v8 = vld [vmem:[#allocation6 + $0xb0] sm:$0xff]  ;;  %v115_v9 = vld [vmem:[#allocation6 + $0xb8] sm:$0xff]  ;;  %v112_v10 = vld [vmem:[#allocation6 + $0xa0] sm:$0xff] }
  0x18   :  { %v113_v11 = vld [vmem:[#allocation6 + $0xa8] sm:$0xff]  ;;  %v110_v12 = vld [vmem:[#allocation6 + $0x90] sm:$0xff]  ;;  %v111_v13 = vld [vmem:[#allocation6 + $0x98] sm:$0xff] }
  0x19   :  { %132 = vmatpush.msra.mxu0 %v118_v4  ;;  %155 = vmatpush.msra.mxu1 %v119_v5  ;;  %v108_v14 = vld [vmem:[#allocation6 + $0x80] sm:$0xff]  ;;  %v214_v15 = vld [vmem:[#allocation9 + $0xf0] sm:$0xff]  ;;  %v109_v17 = vld [vmem:[#allocation6 + $0x88] sm:$0xff] }
  0x1a   :  { %v246_v16 = vld [vmem:[#allocation9 + $0x1f0] sm:$0xff]  ;;  %248 = vmatpush.msra.mxu2 %v214_v15  ;;  %v212_v18 = vld [vmem:[#allocation9 + $0xe0] sm:$0xff]  ;;  %v616_v53 = vld [vmem:[#allocation9 + $0xf8] sm:$0xff] }
  0x1b   :  { %133 = vmatpush.msra.mxu0 %v116_v6  ;;  %156 = vmatpush.msra.mxu1 %v117_v7  ;;  %v244_v19 = vld [vmem:[#allocation9 + $0x1e0] sm:$0xff]  ;;  %v210_v20 = vld [vmem:[#allocation9 + $0xd0] sm:$0xff]  ;;  %v618_v54 = vld [vmem:[#allocation9 + $0x1f8] sm:$0xff] }
  0x1c   :  { %271 = vmatpush.msra.mxu3 %v246_v16  ;;  %v242_v21 = vld [vmem:[#allocation9 + $0x1d0] sm:$0xff]  ;;  %249 = vmatpush.msra.mxu2 %v212_v18  ;;  %v208_v24 = vld [vmem:[#allocation9 + $0xc0] sm:$0xff]  ;;  %v213_v57 = vld [vmem:[#allocation9 + $0xe8] sm:$0xff] }
  0x1d   :  { %134 = vmatpush.msra.mxu0 %v114_v8  ;;  %157 = vmatpush.msra.mxu1 %v115_v9  ;;  %v106_v22 = vld [vmem:[#allocation6 + $0x70] sm:$0xff]  ;;  %v107_v23 = vld [vmem:[#allocation6 + $0x78] sm:$0xff]  ;;  %v240_v25 = vld [vmem:[#allocation9 + $0x1c0] sm:$0xff] }
  0x1e   :  { %272 = vmatpush.msra.mxu3 %v244_v19  ;;  %v104_v26 = vld [vmem:[#allocation6 + $0x60] sm:$0xff]  ;;  %v105_v27 = vld [vmem:[#allocation6 + $0x68] sm:$0xff]  ;;  %250 = vmatpush.msra.mxu2 %v210_v20  ;;  %v206_v28 = vld [vmem:[#allocation9 + $0xb0] sm:$0xff] }
  0x1f   :  { %135 = vmatpush.msra.mxu0 %v112_v10  ;;  %158 = vmatpush.msra.mxu1 %v113_v11  ;;  %v238_v29 = vld [vmem:[#allocation9 + $0x1b0] sm:$0xff]  ;;  %v204_v32 = vld [vmem:[#allocation9 + $0xa0] sm:$0xff]  ;;  %v245_v58 = vld [vmem:[#allocation9 + $0x1e8] sm:$0xff] }
  0x20   :  { %273 = vmatpush.msra.mxu3 %v242_v21  ;;  %v102_v30 = vld [vmem:[#allocation6 + $0x50] sm:$0xff]  ;;  %v103_v31 = vld [vmem:[#allocation6 + $0x58] sm:$0xff]  ;;  %251 = vmatpush.msra.mxu2 %v208_v24  ;;  %v236_v33 = vld [vmem:[#allocation9 + $0x1a0] sm:$0xff] }
  0x21   :  { %136 = vmatpush.msra.mxu0 %v110_v12  ;;  %159 = vmatpush.msra.mxu1 %v111_v13  ;;  %v100_v34 = vld [vmem:[#allocation6 + $0x40] sm:$0xff]  ;;  %v101_v35 = vld [vmem:[#allocation6 + $0x48] sm:$0xff]  ;;  %v202_v36 = vld [vmem:[#allocation9 + $0x90] sm:$0xff] }
  0x22   :  { %274 = vmatpush.msra.mxu3 %v240_v25  ;;  %252 = vmatpush.msra.mxu2 %v206_v28  ;;  %v234_v37 = vld [vmem:[#allocation9 + $0x190] sm:$0xff]  ;;  %v200_v40 = vld [vmem:[#allocation9 + $0x80] sm:$0xff]  ;;  %v211_v61 = vld [vmem:[#allocation9 + $0xd8] sm:$0xff] }
  0x23   :  { %137 = vmatpush.msra.mxu0 %v108_v14  ;;  %160 = vmatpush.msra.mxu1 %v109_v17  ;;  %v98_v38 = vld [vmem:[#allocation6 + $0x30] sm:$0xff]  ;;  %v99_v39 = vld [vmem:[#allocation6 + $0x38] sm:$0xff]  ;;  %v232_v41 = vld [vmem:[#allocation9 + $0x180] sm:$0xff] }
  0x24   :  { %275 = vmatpush.msra.mxu3 %v238_v29  ;;  %253 = vmatpush.msra.mxu2 %v204_v32  ;;  %v96_v42 = vld [vmem:[#allocation6 + $0x20] sm:$0xff]  ;;  %v97_v43 = vld [vmem:[#allocation6 + $0x28] sm:$0xff]  ;;  %v198_v44 = vld [vmem:[#allocation9 + $0x70] sm:$0xff] }
  0x25   :  { %138 = vmatpush.msra.mxu0 %v106_v22  ;;  %161 = vmatpush.msra.mxu1 %v107_v23  ;;  %v230_v45 = vld [vmem:[#allocation9 + $0x170] sm:$0xff]  ;;  %v196_v48 = vld [vmem:[#allocation9 + $0x60] sm:$0xff]  ;;  %v243_v62 = vld [vmem:[#allocation9 + $0x1d8] sm:$0xff] }
  0x26   :  { %276 = vmatpush.msra.mxu3 %v236_v33  ;;  %254 = vmatpush.msra.mxu2 %v202_v36  ;;  %v94_v46 = vld [vmem:[#allocation6 + $0x10] sm:$0xff]  ;;  %v95_v47 = vld [vmem:[#allocation6 + $0x18] sm:$0xff]  ;;  %v228_v49 = vld [vmem:[#allocation9 + $0x160] sm:$0xff] }
  0x27   :  { %139 = vmatpush.msra.mxu0 %v104_v26  ;;  %162 = vmatpush.msra.mxu1 %v105_v27  ;;  %v92_v50 = vld [vmem:[#allocation6] sm:$0xff]  ;;  %v93_v51 = vld [vmem:[#allocation6 + $0x8] sm:$0xff]  ;;  %v90_v52 = vld [vmem:[#allocation3] sm:$0xff] }
  0x28   :  { %277 = vmatpush.msra.mxu3 %v234_v37  ;;  %255 = vmatpush.msra.mxu2 %v200_v40  ;;  %v194_v55 = vld [vmem:[#allocation9 + $0x50] sm:$0xff]  ;;  %v192_v59 = vld [vmem:[#allocation9 + $0x40] sm:$0xff]  ;;  %v209_v1 = vld [vmem:[#allocation9 + $0xc8] sm:$0xff] }
  0x29   :  { %140 = vmatpush.msra.mxu0 %v102_v30  ;;  %163 = vmatpush.msra.mxu1 %v103_v31  ;;  %v226_v56 = vld [vmem:[#allocation9 + $0x150] sm:$0xff]  ;;  %v224_v60 = vld [vmem:[#allocation9 + $0x140] sm:$0xff]  ;;  %v241_v2 = vld [vmem:[#allocation9 + $0x1c8] sm:$0xff] }
  0x2a   :  { %278 = vmatpush.msra.mxu3 %v232_v41  ;;  %256 = vmatpush.msra.mxu2 %v198_v44  ;;  %v190_v63 = vld [vmem:[#allocation9 + $0x30] sm:$0xff]  ;;  %v207_v4 = vld [vmem:[#allocation9 + $0xb8] sm:$0xff]  ;;  %v188_v6 = vld [vmem:[#allocation9 + $0x20] sm:$0xff] }
  0x2b   :  { %141 = vmatpush.msra.mxu0 %v100_v34  ;;  %164 = vmatpush.msra.mxu1 %v101_v35  ;;  %v222_v0 = vld [vmem:[#allocation9 + $0x130] sm:$0xff]  ;;  %v239_v5 = vld [vmem:[#allocation9 + $0x1b8] sm:$0xff]  ;;  %v220_v7 = vld [vmem:[#allocation9 + $0x120] sm:$0xff] }
  0x2c   :  { %279 = vmatpush.msra.mxu3 %v230_v45  ;;  %257 = vmatpush.msra.mxu2 %v196_v48  ;;  %v91_v3 = vld [vmem:[#allocation3 + $0x8] sm:$0xff]  ;;  %v205_v8 = vld [vmem:[#allocation9 + $0xa8] sm:$0xff]  ;;  %v184_v14 = vld [vmem:[#allocation9] sm:$0xff] }
  0x2d   :  { %142 = vmatpush.msra.mxu0 %v98_v38  ;;  %165 = vmatpush.msra.mxu1 %v99_v39  ;;  %v237_v9 = vld [vmem:[#allocation9 + $0x1a8] sm:$0xff]  ;;  %v186_v10 = vld [vmem:[#allocation9 + $0x10] sm:$0xff]  ;;  %v203_v12 = vld [vmem:[#allocation9 + $0x98] sm:$0xff] }
  0x2e   :  { %280 = vmatpush.msra.mxu3 %v228_v49  ;;  %258 = vmatpush.msra.mxu2 %v194_v55  ;;  %v218_v11 = vld [vmem:[#allocation9 + $0x110] sm:$0xff]  ;;  %v235_v13 = vld [vmem:[#allocation9 + $0x198] sm:$0xff]  ;;  %v216_v15 = vld [vmem:[#allocation9 + $0x100] sm:$0xff] }
  0x2f   :  { %143 = vmatpush.msra.mxu0 %v96_v42  ;;  %166 = vmatpush.msra.mxu1 %v97_v43  ;;  %v201_v16 = vld [vmem:[#allocation9 + $0x88] sm:$0xff]  ;;  %v199_v18 = vld [vmem:[#allocation9 + $0x78] sm:$0xff] }
  0x30   :  { %281 = vmatpush.msra.mxu3 %v226_v56  ;;  %259 = vmatpush.msra.mxu2 %v192_v59  ;;  %v233_v17 = vld [vmem:[#allocation9 + $0x188] sm:$0xff]  ;;  %v231_v19 = vld [vmem:[#allocation9 + $0x178] sm:$0xff] }
  0x31   :  { %144 = vmatpush.msra.mxu0 %v94_v46  ;;  %167 = vmatpush.msra.mxu1 %v95_v47  ;;  %v197_v20 = vld [vmem:[#allocation9 + $0x68] sm:$0xff]  ;;  %v195_v22 = vld [vmem:[#allocation9 + $0x58] sm:$0xff] }
  0x32   :  { %282 = vmatpush.msra.mxu3 %v224_v60  ;;  %260 = vmatpush.msra.mxu2 %v190_v63  ;;  %v229_v21 = vld [vmem:[#allocation9 + $0x168] sm:$0xff]  ;;  %v227_v23 = vld [vmem:[#allocation9 + $0x158] sm:$0xff] }
  0x33   :  { %145 = vmatpush.msra.mxu0 %v92_v50  ;;  %168 = vmatpush.msra.mxu1 %v93_v51  ;;  %v193_v24 = vld [vmem:[#allocation9 + $0x48] sm:$0xff]  ;;  %v191_v26 = vld [vmem:[#allocation9 + $0x38] sm:$0xff] }
  0x34   :  { %146 = vmatmul.f32.vlgmr.msra.gmra.mxu0 %v90_v52  ;;  %169 = vmatmul.f32.vlgmr.msra.gmra.mxu1 %v90_v52  ;;  %v225_v25 = vld [vmem:[#allocation9 + $0x148] sm:$0xff]  ;;  %v223_v27 = vld [vmem:[#allocation9 + $0x138] sm:$0xff] }
  0x35   :  { %294 = vmatpush.msrb.mxu0 %v616_v53  ;;  %317 = vmatpush.msrb.mxu1 %v618_v54  ;;  %v189_v28 = vld [vmem:[#allocation9 + $0x28] sm:$0xff]  ;;  %v187_v30 = vld [vmem:[#allocation9 + $0x18] sm:$0xff] }
  0x36   :  { %283 = vmatpush.msra.mxu3 %v222_v0  ;;  %261 = vmatpush.msra.mxu2 %v188_v6  ;;  %v221_v29 = vld [vmem:[#allocation9 + $0x128] sm:$0xff]  ;;  %v219_v31 = vld [vmem:[#allocation9 + $0x118] sm:$0xff] }
  0x37   :  { %295 = vmatpush.msrb.mxu0 %v213_v57  ;;  %318 = vmatpush.msrb.mxu1 %v245_v58  ;;  %v185_v32 = vld [vmem:[#allocation9 + $0x8] sm:$0xff]  ;;  %v124_v34 = vld [vmem:[#allocation8] sm:$0x3] }
  0x38   :  { %284 = vmatpush.msra.mxu3 %v220_v7  ;;  %262 = vmatpush.msra.mxu2 %v186_v10  ;;  %v217_v33 = vld [vmem:[#allocation9 + $0x108] sm:$0xff]  ;;  %v126_v35 = vperm.slane %v124_v34, 0  ;;  %v127_v36 = vperm.slane %v124_v34, 1 }
  0x39   :  { %296 = vmatpush.msrb.mxu0 %v211_v61  ;;  %319 = vmatpush.msrb.mxu1 %v243_v62  ;;  %v355_v49 = vld [vmem:[%s637_s4] sm:$0x3]  ;;  %s567_s4 = smov [#allocation11]  }
  0x3a   :  { %285 = vmatpush.msra.mxu3 %v218_v11  ;;  %263 = vmatpush.msra.mxu2 %v184_v14  ;;  %v358_v50 = vperm.slane %v355_v49, 1  ;;  %v357_v55 = vperm.slane %v355_v49, 0  ;;  %s373_s15 = sshll.u32 %s567_s4, 4  ;;  %s374_s15 = int_to_ptr.vmem [resolvable:$true] %s373_s15 }
  0x3b   :  { %297 = vmatpush.msrb.mxu0 %v209_v1  ;;  %320 = vmatpush.msrb.mxu1 %v241_v2 }
  0x3c   :  { %149 = vmatmul.f32.gmra.mxu0 %v91_v3  ;;  %172 = vmatmul.f32.gmra.mxu1 %v91_v3 }
  0x3d   :  { %298 = vmatpush.msrb.mxu0 %v207_v4  ;;  %321 = vmatpush.msrb.mxu1 %v239_v5 }
  0x3e   :  { %286 = vmatpush.msra.mxu3 %v216_v15  ;;  %390 = vmatpush.msrb.mxu2 %v616_v53 }
  0x3f   :  { %299 = vmatpush.msrb.mxu0 %v205_v8  ;;  %322 = vmatpush.msrb.mxu1 %v237_v9 }
  0x40   :  { %406 = vmatpush.msrb.mxu3 %v618_v54  ;;  %391 = vmatpush.msrb.mxu2 %v213_v57 }
  0x41   :  { %300 = vmatpush.msrb.mxu0 %v203_v12  ;;  %323 = vmatpush.msrb.mxu1 %v235_v13 }
  0x42   :  { %407 = vmatpush.msrb.mxu3 %v245_v58  ;;  %392 = vmatpush.msrb.mxu2 %v211_v61 }
  0x43   :  { %301 = vmatpush.msrb.mxu0 %v201_v16  ;;  %324 = vmatpush.msrb.mxu1 %v233_v17 }
  0x44   :  { %408 = vmatpush.msrb.mxu3 %v243_v62  ;;  %393 = vmatpush.msrb.mxu2 %v209_v1 }
  0x45   :  { %302 = vmatpush.msrb.mxu0 %v199_v18  ;;  %325 = vmatpush.msrb.mxu1 %v231_v19 }
  0x46   :  { %409 = vmatpush.msrb.mxu3 %v241_v2  ;;  %394 = vmatpush.msrb.mxu2 %v207_v4 }
  0x47   :  { %303 = vmatpush.msrb.mxu0 %v197_v20  ;;  %326 = vmatpush.msrb.mxu1 %v229_v21 }
  0x48   :  { %410 = vmatpush.msrb.mxu3 %v239_v5  ;;  %395 = vmatpush.msrb.mxu2 %v205_v8 }
  0x49   :  { %304 = vmatpush.msrb.mxu0 %v195_v22  ;;  %327 = vmatpush.msrb.mxu1 %v227_v23 }
  0x4a   :  { %411 = vmatpush.msrb.mxu3 %v237_v9  ;;  %396 = vmatpush.msrb.mxu2 %v203_v12 }
  0x4b   :  { %305 = vmatpush.msrb.mxu0 %v193_v24  ;;  %328 = vmatpush.msrb.mxu1 %v225_v25 }
  0x4c   :  { %412 = vmatpush.msrb.mxu3 %v235_v13  ;;  %397 = vmatpush.msrb.mxu2 %v201_v16 }
  0x4d   :  { %306 = vmatpush.msrb.mxu0 %v191_v26  ;;  %329 = vmatpush.msrb.mxu1 %v223_v27 }
  0x4e   :  { %413 = vmatpush.msrb.mxu3 %v233_v17  ;;  %398 = vmatpush.msrb.mxu2 %v199_v18 }
  0x4f   :  { %307 = vmatpush.msrb.mxu0 %v189_v28  ;;  %330 = vmatpush.msrb.mxu1 %v221_v29 }
  0x50   :  { %414 = vmatpush.msrb.mxu3 %v231_v19  ;;  %399 = vmatpush.msrb.mxu2 %v197_v20 }
  0x51   :  { %308 = vmatpush.msrb.mxu0 %v187_v30  ;;  %331 = vmatpush.msrb.mxu1 %v219_v31 }
  0x52   :  { %415 = vmatpush.msrb.mxu3 %v229_v21  ;;  %400 = vmatpush.msrb.mxu2 %v195_v22 }
  0x53   :  { %309 = vmatpush.msrb.mxu0 %v185_v32  ;;  %332 = vmatpush.msrb.mxu1 %v217_v33 }
  0x54   :  { %416 = vmatpush.msrb.mxu3 %v227_v23  ;;  %401 = vmatpush.msrb.mxu2 %v193_v24 }
  0x56   :  { %417 = vmatpush.msrb.mxu3 %v225_v25  ;;  %402 = vmatpush.msrb.mxu2 %v191_v26 }
  0x58   :  { %418 = vmatpush.msrb.mxu3 %v223_v27  ;;  %403 = vmatpush.msrb.mxu2 %v189_v28 }
  0x5a   :  { %419 = vmatpush.msrb.mxu3 %v221_v29  ;;  %404 = vmatpush.msrb.mxu2 %v187_v30 }
  0x5c   :  { %420 = vmatpush.msrb.mxu3 %v219_v31  ;;  %405 = vmatpush.msrb.mxu2 %v185_v32 }
  0x5e   :  { %421 = vmatpush.msrb.mxu3 %v217_v33 }
  0xb1   :  { %v147_v37 = vpop.f32.mrf.mxu0  ;;  %v170_v38 = vpop.f32.mrf.mxu1 }
  0xb2   :  { %v148_v39 = vadd.f32 %v147_v37, %v126_v35  ;;  %v171_v40 = vadd.f32 %v170_v38, %v127_v36 }
  0xb4   :  { %v176_v41 = vmax.f32 %v148_v39, 0.0  ;;  %v177_v42 = vmax.f32 %v171_v40, 0.0 }
  0xb6   :  { %264 = vmatmul.f32.vlgmr.msra.gmra.mxu2 %v176_v41  ;;  %287 = vmatmul.f32.vlgmr.msra.gmra.mxu3 %v177_v42 }
  0xb7   :  { %310 = vmatmul.f32.vlgmr.msrb.gmra.mxu0 %v176_v41  ;;  %333 = vmatmul.f32.vlgmr.msrb.gmra.mxu1 %v177_v42 }
  0xb9   :  { %v150_v43 = vpop.f32.mrf.mxu0  ;;  %v173_v44 = vpop.f32.mrf.mxu1 }
  0xba   :  { %v151_v45 = vadd.f32 %v150_v43, %v126_v35  ;;  %v174_v46 = vadd.f32 %v173_v44, %v127_v36 }
  0xbc   :  { %v178_v47 = vmax.f32 %v151_v45, 0.0  ;;  %v179_v48 = vmax.f32 %v174_v46, 0.0 }
  0xbe   :  { %267 = vmatmul.f32.gmra.mxu2 %v178_v47  ;;  %290 = vmatmul.f32.gmra.mxu3 %v179_v48 }
  0xc6   :  { %313 = vmatmul.f32.vlgmr.msrb.gmra.mxu2 %v178_v47  ;;  %336 = vmatmul.f32.vlgmr.msrb.gmra.mxu3 %v179_v48 }
 0x134   :  { %v311_v51 = vpop.f32.mrf.mxu0  ;;  %v334_v52 = vpop.f32.mrf.mxu1 }
 0x135   :  { %v335_v53 = vadd.f32 %v334_v52, %v311_v51 }
 0x137   :  { %v362_v54 = vadd.f32 %v358_v50, %v335_v53 }
 0x139   :  { %366 = vst [vmem:[#allocation11 + $0x8] sm:$0xff] %v362_v54  ;;  %v265_v56 = vpop.f32.mrf.mxu2  ;;  %v288_v57 = vpop.f32.mrf.mxu3 }
 0x13a   :  { %v289_v58 = vadd.f32 %v288_v57, %v265_v56 }
 0x13c   :  { %v361_v59 = vadd.f32 %v357_v55, %v289_v58 }
 0x13e   :  { %365 = vst [vmem:[#allocation11] sm:$0xff] %v361_v59 }
 0x141   :  { %v268_v60 = vpop.f32.mrf.mxu2  ;;  %v291_v61 = vpop.f32.mrf.mxu3 }
 0x142   :  { %v292_v62 = vadd.f32 %v291_v61, %v268_v60 }
 0x144   :  { %v363_v63 = vadd.f32 %v357_v55, %v292_v62 }
 0x146   :  { %367 = vst [vmem:[#allocation11 + $0x10] sm:$0xff] %v363_v63 }
 0x149   :  { %v314_v0 = vpop.f32.mrf.mxu2  ;;  %v337_v1 = vpop.f32.mrf.mxu3 }
 0x14a   :  { %v338_v2 = vadd.f32 %v337_v1, %v314_v0 }
 0x14c   :  { %v364_v3 = vadd.f32 %v358_v50, %v338_v2 }
 0x14e   :  { %368 = vst [vmem:[#allocation11 + $0x18] sm:$0xff] %v364_v3 }
 0x14f   :  { %381 = dma.vmem_to_hbm [thread:$0]  %s374_s15, 512, %s376_s18, [#allocation5], %s560_s26, %s560_s26, %s561_s27  }
 0x150   :  { %557 = dma.done.wait [#allocation5], 512  }
 0x151   :  { %558 = vsyncadd [#allocation5], 4294966784 }
 0x152   :  { %386 = vsyncpa [#allocation4], 1 }
 0x153   :  { %387 = vsyncpa [#allocation7], 1 }
 0x154   :  { %388 = vsyncpa [#allocation10], 1 }
 0x155   :  { %389 = vsyncpa [#allocation5], 1 }

// kernel: tpu_custom_call.1
= control target key start
LH: loop header
LB: loop body
LE: loop exit
PB: predicated region body
PF: predicated region fallthrough
CT: control target
= control target key end

     0   :  { %10 = vsyncpa [#allocation4], 0  ;;  %s633_s0 = inlined_call_operand.hbm [shape: f32[16,128], index: 0, kind: input, shape index: {}]   ;;  %s634_s1 = inlined_call_operand.hbm [shape: f32[128,256], index: 1, kind: input, shape index: {}]   ;;  %s635_s2 = inlined_call_operand.hbm [shape: f32[1,256], index: 2, kind: input, shape index: {}]   ;;  %s636_s3 = inlined_call_operand.hbm [shape: f32[256,256], index: 3, kind: input, shape index: {}]   ;;  %s637_s4 = inlined_call_operand.vmem [shape: f32[1,256], index: 4, kind: input, shape index: {}]   ;;  %s638_s5 = inlined_call_operand.hbm [shape: f32[16,256], index: 5, kind: output, shape index: {}]  }
   0x1   :  { %11 = vsyncpa [#allocation7], 0 }
   0x2   :  { %12 = vsyncpa [#allocation10], 0  ;;  %s31_s20 = sshll.u32 %s634_s1, 4  ;;  %s32_s20 = int_to_ptr.hbm [resolvable:$true] %s31_s20 }
   0x3   :  { %13 = vsyncpa [#allocation5], 0  ;;  %s559_s21 = smov [#allocation6]   ;;  %s18_s25 = sshll.u32 %s633_s0, 4  ;;  %s19_s25 = int_to_ptr.hbm [resolvable:$true] %s18_s25 }
   0x4   :  { %s33_s22 = sshll.u32 %s559_s21, 4  ;;  %s560_s26 = smov 256   ;;  %s34_s22 = int_to_ptr.vmem [resolvable:$true] %s33_s22 }
   0x5   :  { %s561_s27 = smov 16   ;;  %s562_s28 = smov [#allocation3]  }
   0x6   :  { %39 = dma.hbm_to_vmem [thread:$0]  %s32_s20, 4096, %s34_s22, [#allocation7], %s560_s26, %s560_s26, %s561_s27  }
   0x7   :  { %s20_s29 = sshll.u32 %s562_s28, 4  ;;  %s563_s1 = smov 128   ;;  %s21_s29 = int_to_ptr.vmem [resolvable:$true] %s20_s29 }
   0x8   :  { %s564_s30 = smov 8   ;;  %s45_s8 = sshll.u32 %s635_s2, 4  ;;  %s46_s8 = int_to_ptr.hbm [resolvable:$true] %s45_s8 }
   0x9   :  { %26 = dma.hbm_to_vmem [thread:$0]  %s19_s25, 256, %s21_s29, [#allocation4], %s563_s1, %s563_s1, %s564_s30  }
   0xa   :  { %s565_s9 = smov [#allocation8]   ;;  %s55_s12 = sshll.u32 %s636_s3, 4  ;;  %s56_s12 = int_to_ptr.hbm [resolvable:$true] %s55_s12 }
   0xb   :  { %s47_s0 = sshll.u32 %s565_s9, 4  ;;  %s566_s13 = smov [#allocation9]   ;;  %s48_s0 = int_to_ptr.vmem [resolvable:$true] %s47_s0 }
   0xc   :  { %50 = dma.hbm_to_vmem [thread:$0]  %s46_s8, 32, %s48_s0, [#allocation7]  }
   0xd   :  { %s57_s14 = sshll.u32 %s566_s13, 4  ;;  %s58_s14 = int_to_ptr.vmem [resolvable:$true] %s57_s14 }
   0xe   :  { %63 = dma.hbm_to_vmem [thread:$0]  %s56_s12, 8192, %s58_s14, [#allocation10], %s560_s26, %s560_s26, %s561_s27  }
   0xf   :  { %551 = dma.done.wait [#allocation4], 256  }
  0x10   :  { %552 = vsyncadd [#allocation4], 4294967040 }
  0x11   :  { %553 = dma.done.wait [#allocation7], 4128  }
  0x12   :  { %554 = vsyncadd [#allocation7], 4294963168 }
  0x13   :  { %555 = dma.done.wait [#allocation10], 8192  }
  0x14   :  { %556 = vsyncadd [#allocation10], 4294959104  ;;  %v122_v0 = vld [vmem:[#allocation6 + $0xf0] sm:$0xff]  ;;  %v123_v1 = vld [vmem:[#allocation6 + $0xf8] sm:$0xff]  ;;  %s375_s18 = sshll.u32 %s638_s5, 4  ;;  %s376_s18 = int_to_ptr.hbm [resolvable:$true] %s375_s18 }
  0x15   :  { %v120_v2 = vld [vmem:[#allocation6 + $0xe0] sm:$0xff]  ;;  %130 = vmatpush.msra.mxu0 %v122_v0  ;;  %153 = vmatpush.msra.mxu1 %v123_v1  ;;  %v121_v3 = vld [vmem:[#allocation6 + $0xe8] sm:$0xff]  ;;  %v118_v4 = vld [vmem:[#allocation6 + $0xd0] sm:$0xff] }
  0x16   :  { %v119_v5 = vld [vmem:[#allocation6 + $0xd8] sm:$0xff]  ;;  %v116_v6 = vld [vmem:[#allocation6 + $0xc0] sm:$0xff]  ;;  %v117_v7 = vld [vmem:[#allocation6 + $0xc8] sm:$0xff] }
  0x17   :  { %131 = vmatpush.msra.mxu0 %v120_v2  ;;  %154 = vmatpush.msra.mxu1 %v121_v3  ;;  %v114_v8 = vld [vmem:[#allocation6 + $0xb0] sm:$0xff]  ;;  %v115_v9 = vld [vmem:[#allocation6 + $0xb8] sm:$0xff]  ;;  %v112_v10 = vld [vmem:[#allocation6 + $0xa0] sm:$0xff] }
  0x18   :  { %v113_v11 = vld [vmem:[#allocation6 + $0xa8] sm:$0xff]  ;;  %v110_v12 = vld [vmem:[#allocation6 + $0x90] sm:$0xff]  ;;  %v111_v13 = vld [vmem:[#allocation6 + $0x98] sm:$0xff] }
  0x19   :  { %132 = vmatpush.msra.mxu0 %v118_v4  ;;  %155 = vmatpush.msra.mxu1 %v119_v5  ;;  %v108_v14 = vld [vmem:[#allocation6 + $0x80] sm:$0xff]  ;;  %v214_v15 = vld [vmem:[#allocation9 + $0xf0] sm:$0xff]  ;;  %v109_v17 = vld [vmem:[#allocation6 + $0x88] sm:$0xff] }
  0x1a   :  { %v246_v16 = vld [vmem:[#allocation9 + $0x1f0] sm:$0xff]  ;;  %248 = vmatpush.msra.mxu2 %v214_v15  ;;  %v212_v18 = vld [vmem:[#allocation9 + $0xe0] sm:$0xff]  ;;  %v616_v53 = vld [vmem:[#allocation9 + $0xf8] sm:$0xff] }
  0x1b   :  { %133 = vmatpush.msra.mxu0 %v116_v6  ;;  %156 = vmatpush.msra.mxu1 %v117_v7  ;;  %v244_v19 = vld [vmem:[#allocation9 + $0x1e0] sm:$0xff]  ;;  %v210_v20 = vld [vmem:[#allocation9 + $0xd0] sm:$0xff]  ;;  %v618_v54 = vld [vmem:[#allocation9 + $0x1f8] sm:$0xff] }
  0x1c   :  { %271 = vmatpush.msra.mxu3 %v246_v16  ;;  %v242_v21 = vld [vmem:[#allocation9 + $0x1d0] sm:$0xff]  ;;  %249 = vmatpush.msra.mxu2 %v212_v18  ;;  %v208_v24 = vld [vmem:[#allocation9 + $0xc0] sm:$0xff]  ;;  %v213_v57 = vld [vmem:[#allocation9 + $0xe8] sm:$0xff] }
  0x1d   :  { %134 = vmatpush.msra.mxu0 %v114_v8  ;;  %157 = vmatpush.msra.mxu1 %v115_v9  ;;  %v106_v22 = vld [vmem:[#allocation6 + $0x70] sm:$0xff]  ;;  %v107_v23 = vld [vmem:[#allocation6 + $0x78] sm:$0xff]  ;;  %v240_v25 = vld [vmem:[#allocation9 + $0x1c0] sm:$0xff] }
  0x1e   :  { %272 = vmatpush.msra.mxu3 %v244_v19  ;;  %v104_v26 = vld [vmem:[#allocation6 + $0x60] sm:$0xff]  ;;  %v105_v27 = vld [vmem:[#allocation6 + $0x68] sm:$0xff]  ;;  %250 = vmatpush.msra.mxu2 %v210_v20  ;;  %v206_v28 = vld [vmem:[#allocation9 + $0xb0] sm:$0xff] }
  0x1f   :  { %135 = vmatpush.msra.mxu0 %v112_v10  ;;  %158 = vmatpush.msra.mxu1 %v113_v11  ;;  %v238_v29 = vld [vmem:[#allocation9 + $0x1b0] sm:$0xff]  ;;  %v204_v32 = vld [vmem:[#allocation9 + $0xa0] sm:$0xff]  ;;  %v245_v58 = vld [vmem:[#allocation9 + $0x1e8] sm:$0xff] }
  0x20   :  { %273 = vmatpush.msra.mxu3 %v242_v21  ;;  %v102_v30 = vld [vmem:[#allocation6 + $0x50] sm:$0xff]  ;;  %v103_v31 = vld [vmem:[#allocation6 + $0x58] sm:$0xff]  ;;  %251 = vmatpush.msra.mxu2 %v208_v24  ;;  %v236_v33 = vld [vmem:[#allocation9 + $0x1a0] sm:$0xff] }
  0x21   :  { %136 = vmatpush.msra.mxu0 %v110_v12  ;;  %159 = vmatpush.msra.mxu1 %v111_v13  ;;  %v100_v34 = vld [vmem:[#allocation6 + $0x40] sm:$0xff]  ;;  %v101_v35 = vld [vmem:[#allocation6 + $0x48] sm:$0xff]  ;;  %v202_v36 = vld [vmem:[#allocation9 + $0x90] sm:$0xff] }
  0x22   :  { %274 = vmatpush.msra.mxu3 %v240_v25  ;;  %252 = vmatpush.msra.mxu2 %v206_v28  ;;  %v234_v37 = vld [vmem:[#allocation9 + $0x190] sm:$0xff]  ;;  %v200_v40 = vld [vmem:[#allocation9 + $0x80] sm:$0xff]  ;;  %v211_v61 = vld [vmem:[#allocation9 + $0xd8] sm:$0xff] }
  0x23   :  { %137 = vmatpush.msra.mxu0 %v108_v14  ;;  %160 = vmatpush.msra.mxu1 %v109_v17  ;;  %v98_v38 = vld [vmem:[#allocation6 + $0x30] sm:$0xff]  ;;  %v99_v39 = vld [vmem:[#allocation6 + $0x38] sm:$0xff]  ;;  %v232_v41 = vld [vmem:[#allocation9 + $0x180] sm:$0xff] }
  0x24   :  { %275 = vmatpush.msra.mxu3 %v238_v29  ;;  %253 = vmatpush.msra.mxu2 %v204_v32  ;;  %v96_v42 = vld [vmem:[#allocation6 + $0x20] sm:$0xff]  ;;  %v97_v43 = vld [vmem:[#allocation6 + $0x28] sm:$0xff]  ;;  %v198_v44 = vld [vmem:[#allocation9 + $0x70] sm:$0xff] }
  0x25   :  { %138 = vmatpush.msra.mxu0 %v106_v22  ;;  %161 = vmatpush.msra.mxu1 %v107_v23  ;;  %v230_v45 = vld [vmem:[#allocation9 + $0x170] sm:$0xff]  ;;  %v196_v48 = vld [vmem:[#allocation9 + $0x60] sm:$0xff]  ;;  %v243_v62 = vld [vmem:[#allocation9 + $0x1d8] sm:$0xff] }
  0x26   :  { %276 = vmatpush.msra.mxu3 %v236_v33  ;;  %254 = vmatpush.msra.mxu2 %v202_v36  ;;  %v94_v46 = vld [vmem:[#allocation6 + $0x10] sm:$0xff]  ;;  %v95_v47 = vld [vmem:[#allocation6 + $0x18] sm:$0xff]  ;;  %v228_v49 = vld [vmem:[#allocation9 + $0x160] sm:$0xff] }
  0x27   :  { %139 = vmatpush.msra.mxu0 %v104_v26  ;;  %162 = vmatpush.msra.mxu1 %v105_v27  ;;  %v92_v50 = vld [vmem:[#allocation6] sm:$0xff]  ;;  %v93_v51 = vld [vmem:[#allocation6 + $0x8] sm:$0xff]  ;;  %v90_v52 = vld [vmem:[#allocation3] sm:$0xff] }
  0x28   :  { %277 = vmatpush.msra.mxu3 %v234_v37  ;;  %255 = vmatpush.msra.mxu2 %v200_v40  ;;  %v194_v55 = vld [vmem:[#allocation9 + $0x50] sm:$0xff]  ;;  %v192_v59 = vld [vmem:[#allocation9 + $0x40] sm:$0xff]  ;;  %v209_v1 = vld [vmem:[#allocation9 + $0xc8] sm:$0xff] }
  0x29   :  { %140 = vmatpush.msra.mxu0 %v102_v30  ;;  %163 = vmatpush.msra.mxu1 %v103_v31  ;;  %v226_v56 = vld [vmem:[#allocation9 + $0x150] sm:$0xff]  ;;  %v224_v60 = vld [vmem:[#allocation9 + $0x140] sm:$0xff]  ;;  %v241_v2 = vld [vmem:[#allocation9 + $0x1c8] sm:$0xff] }
  0x2a   :  { %278 = vmatpush.msra.mxu3 %v232_v41  ;;  %256 = vmatpush.msra.mxu2 %v198_v44  ;;  %v190_v63 = vld [vmem:[#allocation9 + $0x30] sm:$0xff]  ;;  %v207_v4 = vld [vmem:[#allocation9 + $0xb8] sm:$0xff]  ;;  %v188_v6 = vld [vmem:[#allocation9 + $0x20] sm:$0xff] }
  0x2b   :  { %141 = vmatpush.msra.mxu0 %v100_v34  ;;  %164 = vmatpush.msra.mxu1 %v101_v35  ;;  %v222_v0 = vld [vmem:[#allocation9 + $0x130] sm:$0xff]  ;;  %v239_v5 = vld [vmem:[#allocation9 + $0x1b8] sm:$0xff]  ;;  %v220_v7 = vld [vmem:[#allocation9 + $0x120] sm:$0xff] }
  0x2c   :  { %279 = vmatpush.msra.mxu3 %v230_v45  ;;  %257 = vmatpush.msra.mxu2 %v196_v48  ;;  %v91_v3 = vld [vmem:[#allocation3 + $0x8] sm:$0xff]  ;;  %v205_v8 = vld [vmem:[#allocation9 + $0xa8] sm:$0xff]  ;;  %v184_v14 = vld [vmem:[#allocation9] sm:$0xff] }
  0x2d   :  { %142 = vmatpush.msra.mxu0 %v98_v38  ;;  %165 = vmatpush.msra.mxu1 %v99_v39  ;;  %v237_v9 = vld [vmem:[#allocation9 + $0x1a8] sm:$0xff]  ;;  %v186_v10 = vld [vmem:[#allocation9 + $0x10] sm:$0xff]  ;;  %v203_v12 = vld [vmem:[#allocation9 + $0x98] sm:$0xff] }
  0x2e   :  { %280 = vmatpush.msra.mxu3 %v228_v49  ;;  %258 = vmatpush.msra.mxu2 %v194_v55  ;;  %v218_v11 = vld [vmem:[#allocation9 + $0x110] sm:$0xff]  ;;  %v235_v13 = vld [vmem:[#allocation9 + $0x198] sm:$0xff]  ;;  %v216_v15 = vld [vmem:[#allocation9 + $0x100] sm:$0xff] }
  0x2f   :  { %143 = vmatpush.msra.mxu0 %v96_v42  ;;  %166 = vmatpush.msra.mxu1 %v97_v43  ;;  %v201_v16 = vld [vmem:[#allocation9 + $0x88] sm:$0xff]  ;;  %v199_v18 = vld [vmem:[#allocation9 + $0x78] sm:$0xff] }
  0x30   :  { %281 = vmatpush.msra.mxu3 %v226_v56  ;;  %259 = vmatpush.msra.mxu2 %v192_v59  ;;  %v233_v17 = vld [vmem:[#allocation9 + $0x188] sm:$0xff]  ;;  %v231_v19 = vld [vmem:[#allocation9 + $0x178] sm:$0xff] }
  0x31   :  { %144 = vmatpush.msra.mxu0 %v94_v46  ;;  %167 = vmatpush.msra.mxu1 %v95_v47  ;;  %v197_v20 = vld [vmem:[#allocation9 + $0x68] sm:$0xff]  ;;  %v195_v22 = vld [vmem:[#allocation9 + $0x58] sm:$0xff] }
  0x32   :  { %282 = vmatpush.msra.mxu3 %v224_v60  ;;  %260 = vmatpush.msra.mxu2 %v190_v63  ;;  %v229_v21 = vld [vmem:[#allocation9 + $0x168] sm:$0xff]  ;;  %v227_v23 = vld [vmem:[#allocation9 + $0x158] sm:$0xff] }
  0x33   :  { %145 = vmatpush.msra.mxu0 %v92_v50  ;;  %168 = vmatpush.msra.mxu1 %v93_v51  ;;  %v193_v24 = vld [vmem:[#allocation9 + $0x48] sm:$0xff]  ;;  %v191_v26 = vld [vmem:[#allocation9 + $0x38] sm:$0xff] }
  0x34   :  { %146 = vmatmul.f32.vlgmr.msra.gmra.mxu0 %v90_v52  ;;  %169 = vmatmul.f32.vlgmr.msra.gmra.mxu1 %v90_v52  ;;  %v225_v25 = vld [vmem:[#allocation9 + $0x148] sm:$0xff]  ;;  %v223_v27 = vld [vmem:[#allocation9 + $0x138] sm:$0xff] }
  0x35   :  { %294 = vmatpush.msrb.mxu0 %v616_v53  ;;  %317 = vmatpush.msrb.mxu1 %v618_v54  ;;  %v189_v28 = vld [vmem:[#allocation9 + $0x28] sm:$0xff]  ;;  %v187_v30 = vld [vmem:[#allocation9 + $0x18] sm:$0xff] }
  0x36   :  { %283 = vmatpush.msra.mxu3 %v222_v0  ;;  %261 = vmatpush.msra.mxu2 %v188_v6  ;;  %v221_v29 = vld [vmem:[#allocation9 + $0x128] sm:$0xff]  ;;  %v219_v31 = vld [vmem:[#allocation9 + $0x118] sm:$0xff] }
  0x37   :  { %295 = vmatpush.msrb.mxu0 %v213_v57  ;;  %318 = vmatpush.msrb.mxu1 %v245_v58  ;;  %v185_v32 = vld [vmem:[#allocation9 + $0x8] sm:$0xff]  ;;  %v124_v34 = vld [vmem:[#allocation8] sm:$0x3] }
  0x38   :  { %284 = vmatpush.msra.mxu3 %v220_v7  ;;  %262 = vmatpush.msra.mxu2 %v186_v10  ;;  %v217_v33 = vld [vmem:[#allocation9 + $0x108] sm:$0xff]  ;;  %v126_v35 = vperm.slane %v124_v34, 0  ;;  %v127_v36 = vperm.slane %v124_v34, 1 }
  0x39   :  { %296 = vmatpush.msrb.mxu0 %v211_v61  ;;  %319 = vmatpush.msrb.mxu1 %v243_v62  ;;  %v355_v49 = vld [vmem:[%s637_s4] sm:$0x3]  ;;  %s567_s4 = smov [#allocation11]  }
  0x3a   :  { %285 = vmatpush.msra.mxu3 %v218_v11  ;;  %263 = vmatpush.msra.mxu2 %v184_v14  ;;  %v358_v50 = vperm.slane %v355_v49, 1  ;;  %v357_v55 = vperm.slane %v355_v49, 0  ;;  %s373_s15 = sshll.u32 %s567_s4, 4  ;;  %s374_s15 = int_to_ptr.vmem [resolvable:$true] %s373_s15 }
  0x3b   :  { %297 = vmatpush.msrb.mxu0 %v209_v1  ;;  %320 = vmatpush.msrb.mxu1 %v241_v2 }
  0x3c   :  { %149 = vmatmul.f32.gmra.mxu0 %v91_v3  ;;  %172 = vmatmul.f32.gmra.mxu1 %v91_v3 }
  0x3d   :  { %298 = vmatpush.msrb.mxu0 %v207_v4  ;;  %321 = vmatpush.msrb.mxu1 %v239_v5 }
  0x3e   :  { %286 = vmatpush.msra.mxu3 %v216_v15  ;;  %390 = vmatpush.msrb.mxu2 %v616_v53 }
  0x3f   :  { %299 = vmatpush.msrb.mxu0 %v205_v8  ;;  %322 = vmatpush.msrb.mxu1 %v237_v9 }
  0x40   :  { %406 = vmatpush.msrb.mxu3 %v618_v54  ;;  %391 = vmatpush.msrb.mxu2 %v213_v57 }
  0x41   :  { %300 = vmatpush.msrb.mxu0 %v203_v12  ;;  %323 = vmatpush.msrb.mxu1 %v235_v13 }
  0x42   :  { %407 = vmatpush.msrb.mxu3 %v245_v58  ;;  %392 = vmatpush.msrb.mxu2 %v211_v61 }
  0x43   :  { %301 = vmatpush.msrb.mxu0 %v201_v16  ;;  %324 = vmatpush.msrb.mxu1 %v233_v17 }
  0x44   :  { %408 = vmatpush.msrb.mxu3 %v243_v62  ;;  %393 = vmatpush.msrb.mxu2 %v209_v1 }
  0x45   :  { %302 = vmatpush.msrb.mxu0 %v199_v18  ;;  %325 = vmatpush.msrb.mxu1 %v231_v19 }
  0x46   :  { %409 = vmatpush.msrb.mxu3 %v241_v2  ;;  %394 = vmatpush.msrb.mxu2 %v207_v4 }
  0x47   :  { %303 = vmatpush.msrb.mxu0 %v197_v20  ;;  %326 = vmatpush.msrb.mxu1 %v229_v21 }
  0x48   :  { %410 = vmatpush.msrb.mxu3 %v239_v5  ;;  %395 = vmatpush.msrb.mxu2 %v205_v8 }
  0x49   :  { %304 = vmatpush.msrb.mxu0 %v195_v22  ;;  %327 = vmatpush.msrb.mxu1 %v227_v23 }
  0x4a   :  { %411 = vmatpush.msrb.mxu3 %v237_v9  ;;  %396 = vmatpush.msrb.mxu2 %v203_v12 }
  0x4b   :  { %305 = vmatpush.msrb.mxu0 %v193_v24  ;;  %328 = vmatpush.msrb.mxu1 %v225_v25 }
  0x4c   :  { %412 = vmatpush.msrb.mxu3 %v235_v13  ;;  %397 = vmatpush.msrb.mxu2 %v201_v16 }
  0x4d   :  { %306 = vmatpush.msrb.mxu0 %v191_v26  ;;  %329 = vmatpush.msrb.mxu1 %v223_v27 }
  0x4e   :  { %413 = vmatpush.msrb.mxu3 %v233_v17  ;;  %398 = vmatpush.msrb.mxu2 %v199_v18 }
  0x4f   :  { %307 = vmatpush.msrb.mxu0 %v189_v28  ;;  %330 = vmatpush.msrb.mxu1 %v221_v29 }
  0x50   :  { %414 = vmatpush.msrb.mxu3 %v231_v19  ;;  %399 = vmatpush.msrb.mxu2 %v197_v20 }
  0x51   :  { %308 = vmatpush.msrb.mxu0 %v187_v30  ;;  %331 = vmatpush.msrb.mxu1 %v219_v31 }
  0x52   :  { %415 = vmatpush.msrb.mxu3 %v229_v21  ;;  %400 = vmatpush.msrb.mxu2 %v195_v22 }
  0x53   :  { %309 = vmatpush.msrb.mxu0 %v185_v32  ;;  %332 = vmatpush.msrb.mxu1 %v217_v33 }
  0x54   :  { %416 = vmatpush.msrb.mxu3 %v227_v23  ;;  %401 = vmatpush.msrb.mxu2 %v193_v24 }
  0x56   :  { %417 = vmatpush.msrb.mxu3 %v225_v25  ;;  %402 = vmatpush.msrb.mxu2 %v191_v26 }
  0x58   :  { %418 = vmatpush.msrb.mxu3 %v223_v27  ;;  %403 = vmatpush.msrb.mxu2 %v189_v28 }
  0x5a   :  { %419 = vmatpush.msrb.mxu3 %v221_v29  ;;  %404 = vmatpush.msrb.mxu2 %v187_v30 }
  0x5c   :  { %420 = vmatpush.msrb.mxu3 %v219_v31  ;;  %405 = vmatpush.msrb.mxu2 %v185_v32 }
  0x5e   :  { %421 = vmatpush.msrb.mxu3 %v217_v33 }
  0xb1   :  { %v147_v37 = vpop.f32.mrf.mxu0  ;;  %v170_v38 = vpop.f32.mrf.mxu1 }
  0xb2   :  { %v148_v39 = vadd.f32 %v147_v37, %v126_v35  ;;  %v171_v40 = vadd.f32 %v170_v38, %v127_v36 }
  0xb4   :  { %v176_v41 = vmax.f32 %v148_v39, 0.0  ;;  %v177_v42 = vmax.f32 %v171_v40, 0.0 }
  0xb6   :  { %264 = vmatmul.f32.vlgmr.msra.gmra.mxu2 %v176_v41  ;;  %287 = vmatmul.f32.vlgmr.msra.gmra.mxu3 %v177_v42 }
  0xb7   :  { %310 = vmatmul.f32.vlgmr.msrb.gmra.mxu0 %v176_v41  ;;  %333 = vmatmul.f32.vlgmr.msrb.gmra.mxu1 %v177_v42 }
  0xb9   :  { %v150_v43 = vpop.f32.mrf.mxu0  ;;  %v173_v44 = vpop.f32.mrf.mxu1 }
  0xba   :  { %v151_v45 = vadd.f32 %v150_v43, %v126_v35  ;;  %v174_v46 = vadd.f32 %v173_v44, %v127_v36 }
  0xbc   :  { %v178_v47 = vmax.f32 %v151_v45, 0.0  ;;  %v179_v48 = vmax.f32 %v174_v46, 0.0 }
  0xbe   :  { %267 = vmatmul.f32.gmra.mxu2 %v178_v47  ;;  %290 = vmatmul.f32.gmra.mxu3 %v179_v48 }
  0xc6   :  { %313 = vmatmul.f32.vlgmr.msrb.gmra.mxu2 %v178_v47  ;;  %336 = vmatmul.f32.vlgmr.msrb.gmra.mxu3 %v179_v48 }
 0x134   :  { %v311_v51 = vpop.f32.mrf.mxu0  ;;  %v334_v52 = vpop.f32.mrf.mxu1 }
 0x135   :  { %v335_v53 = vadd.f32 %v334_v52, %v311_v51 }
 0x137   :  { %v362_v54 = vadd.f32 %v358_v50, %v335_v53 }
 0x139   :  { %366 = vst [vmem:[#allocation11 + $0x8] sm:$0xff] %v362_v54  ;;  %v265_v56 = vpop.f32.mrf.mxu2  ;;  %v288_v57 = vpop.f32.mrf.mxu3 }
 0x13a   :  { %v289_v58 = vadd.f32 %v288_v57, %v265_v56 }
 0x13c   :  { %v361_v59 = vadd.f32 %v357_v55, %v289_v58 }
 0x13e   :  { %365 = vst [vmem:[#allocation11] sm:$0xff] %v361_v59 }
 0x141   :  { %v268_v60 = vpop.f32.mrf.mxu2  ;;  %v291_v61 = vpop.f32.mrf.mxu3 }
 0x142   :  { %v292_v62 = vadd.f32 %v291_v61, %v268_v60 }
 0x144   :  { %v363_v63 = vadd.f32 %v357_v55, %v292_v62 }
 0x146   :  { %367 = vst [vmem:[#allocation11 + $0x10] sm:$0xff] %v363_v63 }
 0x149   :  { %v314_v0 = vpop.f32.mrf.mxu2  ;;  %v337_v1 = vpop.f32.mrf.mxu3 }
 0x14a   :  { %v338_v2 = vadd.f32 %v337_v1, %v314_v0 }
 0x14c   :  { %v364_v3 = vadd.f32 %v358_v50, %v338_v2 }
 0x14e   :  { %368 = vst [vmem:[#allocation11 + $0x18] sm:$0xff] %v364_v3 }
 0x14f   :  { %381 = dma.vmem_to_hbm [thread:$0]  %s374_s15, 512, %s376_s18, [#allocation5], %s560_s26, %s560_s26, %s561_s27  }
 0x150   :  { %557 = dma.done.wait [#allocation5], 512  }
 0x151   :  { %558 = vsyncadd [#allocation5], 4294966784 }
 0x152   :  { %386 = vsyncpa [#allocation4], 1 }
 0x153   :  { %387 = vsyncpa [#allocation7], 1 }
 0x154   :  { %388 = vsyncpa [#allocation10], 1 }
 0x155   :  { %389 = vsyncpa [#allocation5], 1 }

</bundles_post_ra>
